<compile_context>
chip_gen: v5e
topology: v5e:2x2
jax: 0.10.0
libtpu: 0.0.40
codegen_flags: <defaults>
</compile_context>

<pallas_src>
import jax
import jax.numpy as jnp
from jax.experimental import pallas as pl
from jax.experimental.pallas import tpu as pltpu


def _mlp_kernel(x_ref, w1_ref, b1_ref, w2_ref, b2_ref, o_ref):
    # x_ref : (tm, D)   one M-tile of gathered positional encodings
    # w1_ref: (D, D)    first Linear weight (stored (in, out))
    # b1_ref: (1, D)
    # w2_ref: (D, D)    second Linear weight (stored (in, out))
    # b2_ref: (1, D)
    # o_ref : (tm, D)
    x = x_ref[...]
    h = jnp.dot(x, w1_ref[...], preferred_element_type=jnp.float32) + b1_ref[...]
    h = h * jax.nn.sigmoid(h)                 # SiLU: EUP sigmoid + VPU mul
    h = h.astype(w2_ref.dtype)
    y = jnp.dot(h, w2_ref[...], preferred_element_type=jnp.float32) + b2_ref[...]
    o_ref[...] = y.astype(o_ref.dtype)


def _round_up(n, m):
    return ((n + m - 1) // m) * m


def timestep_embedder(timesteps, pe, params):
    """JAX/Pallas equivalent of TimestepEmbedder.forward.

    timesteps: (bs,) int32 indices into the positional-encoding table
    pe:        (max_len, 1, latent_dim)  positional-encoding table
    params:    dict with 'w1' (D, D), 'b1' (D,), 'w2' (D, D), 'b2' (D,)
               (Linear weights stored transposed vs nn.Linear's (out, in))
    returns:   (1, bs, latent_dim)  == time_embed(pe[timesteps]).permute(1,0,2)
    """
    bs = timesteps.shape[0]
    latent_dim = pe.shape[-1]

    # Glue: gather pe rows for the requested timesteps -> (bs, D).
    x = pe[timesteps].reshape(bs, latent_dim)

    # M tiling: sublane-full (multiple of 8), capped at 512 rows per block.
    tm = 512 if bs >= 512 else max(8, _round_up(bs, 8))
    m_pad = _round_up(bs, tm)
    if m_pad != bs:
        x = jnp.pad(x, ((0, m_pad - bs), (0, 0)))

    w1 = params['w1']
    b1 = params['b1'].reshape(1, latent_dim)
    w2 = params['w2']
    b2 = params['b2'].reshape(1, latent_dim)

    out = pl.pallas_call(
        _mlp_kernel,
        out_shape=jax.ShapeDtypeStruct((m_pad, latent_dim), x.dtype),
        grid=(m_pad // tm,),
        in_specs=[
            pl.BlockSpec((tm, latent_dim), lambda i: (i, 0)),          # x tile
            pl.BlockSpec((latent_dim, latent_dim), lambda i: (0, 0)),  # w1 (resident)
            pl.BlockSpec((1, latent_dim), lambda i: (0, 0)),           # b1 (resident)
            pl.BlockSpec((latent_dim, latent_dim), lambda i: (0, 0)),  # w2 (resident)
            pl.BlockSpec((1, latent_dim), lambda i: (0, 0)),           # b2 (resident)
        ],
        out_specs=pl.BlockSpec((tm, latent_dim), lambda i: (i, 0)),
        compiler_params=pltpu.CompilerParams(
            dimension_semantics=("parallel",)),
    )(x, w1, b1, w2, b2)

    out = out[:bs]
    # .permute(1, 0, 2): (bs, 1, D) -> (1, bs, D)
    return out[None, :, :]


def _reference(timesteps, pe, params):
    bs = timesteps.shape[0]
    d = pe.shape[-1]
    x = pe[timesteps].reshape(bs, d)
    h = jax.nn.silu(x @ params['w1'] + params['b1'])
    y = h @ params['w2'] + params['b2']
    return y[None, :, :]


if __name__ == "__main__":
    bs = 2
    latent_dim = 128        # lane-dense (multiple of 128); matches small real configs
    max_len = 64

    key = jax.random.PRNGKey(0)
    kpe, kt, kw1, kb1, kw2, kb2 = jax.random.split(key, 6)

    # Synthetic positional-encoding table, shaped like PositionalEncoding.pe:
    # (max_len, 1, d_model).
    pe = jax.random.normal(kpe, (max_len, 1, latent_dim), dtype=jnp.float32)

    # Integer timesteps (as produced by the diffusion sampler).
    timesteps = jax.random.randint(kt, (bs,), 0, max_len, dtype=jnp.int32)

    # nn.Linear(latent_dim, latent_dim) params, stored transposed (in, out).
    params = {
        'w1': jax.random.normal(kw1, (latent_dim, latent_dim), jnp.float32) * 0.05,
        'b1': jax.random.normal(kb1, (latent_dim,), jnp.float32) * 0.05,
        'w2': jax.random.normal(kw2, (latent_dim, latent_dim), jnp.float32) * 0.05,
        'b2': jax.random.normal(kb2, (latent_dim,), jnp.float32) * 0.05,
    }

    out = timestep_embedder(timesteps, pe, params)
    out = jax.block_until_ready(out)
    ref = _reference(timesteps, pe, params)

    ok = (out.shape == (1, bs, latent_dim)) and bool(
        jnp.allclose(out, ref, atol=1e-5, rtol=1e-5))

    if ok:
        print("KERNEL_OK")
    else:
        print("KERNEL_MISMATCH")
</pallas_src>

<mosaic_0001>
module attributes {stable_mosaic.version = 11 : i64} {
  func.func @_mlp_kernel(%arg0: i32, %arg1: memref<8x128xf32, #tpu.memory_space<vmem>>, %arg2: memref<128x128xf32, #tpu.memory_space<vmem>>, %arg3: memref<1x128xf32, #tpu.memory_space<vmem>>, %arg4: memref<128x128xf32, #tpu.memory_space<vmem>>, %arg5: memref<1x128xf32, #tpu.memory_space<vmem>>, %arg6: memref<8x128xf32, #tpu.memory_space<vmem>>) attributes {dimension_semantics = [#tpu.dimension_semantics<parallel>], iteration_bounds = array<i64: 1>, scalar_prefetch = 0 : i64, scratch_operands = 0 : i64, tpu.core_type = #tpu.core_type<tc>, window_params = [{transform_indices = @transform_0, window_bounds = array<i64: 8, 128>}, {pipeline_mode = #tpu.pipeline_mode<synchronous>, transform_indices = @transform_1, window_bounds = array<i64: 128, 128>}, {pipeline_mode = #tpu.pipeline_mode<synchronous>, transform_indices = @transform_2, window_bounds = array<i64: 1, 128>}, {pipeline_mode = #tpu.pipeline_mode<synchronous>, transform_indices = @transform_3, window_bounds = array<i64: 128, 128>}, {pipeline_mode = #tpu.pipeline_mode<synchronous>, transform_indices = @transform_4, window_bounds = array<i64: 1, 128>}, {transform_indices = @transform_5, window_bounds = array<i64: 8, 128>}]} {
    %c0 = arith.constant 0 : index
    %c0_0 = arith.constant 0 : index
    %0 = vector.load %arg1[%c0, %c0_0] : memref<8x128xf32, #tpu.memory_space<vmem>>, vector<8x128xf32>
    %c0_1 = arith.constant 0 : index
    %c0_2 = arith.constant 0 : index
    %1 = vector.load %arg2[%c0_1, %c0_2] : memref<128x128xf32, #tpu.memory_space<vmem>>, vector<128x128xf32>
    %cst = arith.constant dense<0.000000e+00> : vector<8x128xf32>
    %2 = tpu.matmul %0, %1, %cst {dimension_numbers = #tpu.dot_dimension_numbers<[1], [0], [0], [1], [0, 0, 1, 1], [], []>} : vector<8x128xf32>, vector<128x128xf32>, vector<8x128xf32> -> vector<8x128xf32>
    %c0_3 = arith.constant 0 : index
    %c0_4 = arith.constant 0 : index
    %3 = vector.load %arg3[%c0_3, %c0_4] : memref<1x128xf32, #tpu.memory_space<vmem>>, vector<1x128xf32>
    %4 = vector.broadcast %3 : vector<1x128xf32> to vector<8x128xf32>
    %5 = arith.addf %2, %4 : vector<8x128xf32>
    %6 = arith.negf %5 : vector<8x128xf32>
    %7 = math.exp %6 : vector<8x128xf32>
    %cst_5 = arith.constant 1.000000e+00 : f32
    %8 = vector.broadcast %cst_5 : f32 to vector<8x128xf32>
    %9 = arith.addf %8, %7 : vector<8x128xf32>
    %10 = arith.divf %8, %9 : vector<8x128xf32>
    %11 = arith.mulf %5, %10 : vector<8x128xf32>
    %c0_6 = arith.constant 0 : index
    %c0_7 = arith.constant 0 : index
    %12 = vector.load %arg4[%c0_6, %c0_7] : memref<128x128xf32, #tpu.memory_space<vmem>>, vector<128x128xf32>
    %cst_8 = arith.constant dense<0.000000e+00> : vector<8x128xf32>
    %13 = tpu.matmul %11, %12, %cst_8 {dimension_numbers = #tpu.dot_dimension_numbers<[1], [0], [0], [1], [0, 0, 1, 1], [], []>} : vector<8x128xf32>, vector<128x128xf32>, vector<8x128xf32> -> vector<8x128xf32>
    %c0_9 = arith.constant 0 : index
    %c0_10 = arith.constant 0 : index
    %14 = vector.load %arg5[%c0_9, %c0_10] : memref<1x128xf32, #tpu.memory_space<vmem>>, vector<1x128xf32>
    %15 = vector.broadcast %14 : vector<1x128xf32> to vector<8x128xf32>
    %16 = arith.addf %13, %15 : vector<8x128xf32>
    %c0_11 = arith.constant 0 : index
    %c0_12 = arith.constant 0 : index
    %17 = vector.load %arg6[%c0_11, %c0_12] : memref<8x128xf32, #tpu.memory_space<vmem>>, vector<8x128xf32>
    tpu.vector_store %arg6[%c0_11, %c0_12], %16 {strides = array<i32>} : memref<8x128xf32, #tpu.memory_space<vmem>>, vector<8x128xf32>,
    return
  }
  func.func @transform_0(%arg0: i32) -> (i32, i32) {
    %c0_i32 = arith.constant 0 : i32
    %c0_i32_0 = arith.constant 0 : i32
    return %arg0, %c0_i32 : i32, i32
  }
  func.func @transform_1(%arg0: i32) -> (i32, i32) {
    %c0_i32 = arith.constant 0 : i32
    %c0_i32_0 = arith.constant 0 : i32
    %c0_i32_1 = arith.constant 0 : i32
    return %c0_i32, %c0_i32_0 : i32, i32
  }
  func.func @transform_2(%arg0: i32) -> (i32, i32) {
    %c0_i32 = arith.constant 0 : i32
    %c0_i32_0 = arith.constant 0 : i32
    %c0_i32_1 = arith.constant 0 : i32
    return %c0_i32, %c0_i32_0 : i32, i32
  }
  func.func @transform_3(%arg0: i32) -> (i32, i32) {
    %c0_i32 = arith.constant 0 : i32
    %c0_i32_0 = arith.constant 0 : i32
    %c0_i32_1 = arith.constant 0 : i32
    return %c0_i32, %c0_i32_0 : i32, i32
  }
  func.func @transform_4(%arg0: i32) -> (i32, i32) {
    %c0_i32 = arith.constant 0 : i32
    %c0_i32_0 = arith.constant 0 : i32
    %c0_i32_1 = arith.constant 0 : i32
    return %c0_i32, %c0_i32_0 : i32, i32
  }
  func.func @transform_5(%arg0: i32) -> (i32, i32) {
    %c0_i32 = arith.constant 0 : i32
    %c0_i32_0 = arith.constant 0 : i32
    return %arg0, %c0_i32 : i32, i32
  }
}

</mosaic_0001>

<bundles_post_ra>
// kernel: tpu_custom_call.1
= control target key start
LH: loop header
LB: loop body
LE: loop exit
PB: predicated region body
PF: predicated region fallthrough
CT: control target
= control target key end

     0   :  { %10 = vsyncpa [#allocation3], 0  ;;  %s355_s0 = inlined_call_operand.hbm [shape: f32[8,128], index: 0, kind: input, shape index: {}]   ;;  %s356_s1 = inlined_call_operand.hbm [shape: f32[128,128], index: 1, kind: input, shape index: {}]   ;;  %s357_s2 = inlined_call_operand.vmem [shape: f32[1,128], index: 2, kind: input, shape index: {}]   ;;  %s358_s3 = inlined_call_operand.hbm [shape: f32[128,128], index: 3, kind: input, shape index: {}]   ;;  %s359_s4 = inlined_call_operand.vmem [shape: f32[1,128], index: 4, kind: input, shape index: {}]   ;;  %s360_s5 = inlined_call_operand.hbm [shape: f32[8,128], index: 5, kind: output, shape index: {}]  }
   0x1   :  { %11 = vsyncpa [#allocation6], 0  ;;  %s28_s20 = sshll.u32 %s356_s1, 4  ;;  %s29_s20 = int_to_ptr.hbm [resolvable:$true] %s28_s20 }
   0x2   :  { %12 = vsyncpa [#allocation4], 0  ;;  %s301_s21 = smov [#allocation5]   ;;  %s18_s25 = sshll.u32 %s355_s0, 4  ;;  %s19_s25 = int_to_ptr.hbm [resolvable:$true] %s18_s25 }
   0x3   :  { %s30_s22 = sshll.u32 %s301_s21, 4  ;;  %s302_s26 = smov 128   ;;  %s31_s22 = int_to_ptr.vmem [resolvable:$true] %s30_s22 }
   0x4   :  { %s303_s27 = smov 8   ;;  %s304_s28 = smov [#allocation2]  }
   0x5   :  { %36 = dma.hbm_to_vmem [thread:$0]  %s29_s20, 2048, %s31_s22, [#allocation6], %s302_s26, %s302_s26, %s303_s27  }
   0x6   :  { %s20_s29 = sshll.u32 %s304_s28, 4  ;;  %s43_s7 = sshll.u32 %s358_s3, 4  ;;  %s21_s29 = int_to_ptr.vmem [resolvable:$true] %s20_s29  ;;  %s44_s7 = int_to_ptr.hbm [resolvable:$true] %s43_s7 }
   0x7   :  { %23 = dma.hbm_to_vmem [thread:$0]  %s19_s25, 128, %s21_s29, [#allocation3]  }
   0x8   :  { %s305_s1 = smov [#allocation7]  }
   0x9   :  { %s45_s8 = sshll.u32 %s305_s1, 4  ;;  %s46_s8 = int_to_ptr.vmem [resolvable:$true] %s45_s8 }
   0xa   :  { %51 = dma.hbm_to_vmem [thread:$0]  %s44_s7, 2048, %s46_s8, [#allocation6], %s302_s26, %s302_s26, %s303_s27  }
   0xb   :  { %295 = dma.done.wait [#allocation3], 128  }
   0xc   :  { %296 = vsyncadd [#allocation3], 4294967168 }
   0xd   :  { %297 = dma.done.wait [#allocation6], 4096  }
   0xe   :  { %298 = vsyncadd [#allocation6], 4294963200  ;;  %v82_v0 = vld [vmem:[#allocation5 + $0x78] sm:$0xff]  ;;  %v81_v1 = vld [vmem:[#allocation5 + $0x70] sm:$0xff]  ;;  %s306_s10 = smov [#allocation8]   ;;  %s175_s14 = sshll.u32 %s360_s5, 4  ;;  %s176_s14 = int_to_ptr.hbm [resolvable:$true] %s175_s14 }
   0xf   :  { %87 = vmatpush.msra.mxu0 %v82_v0  ;;  %v80_v2 = vld [vmem:[#allocation5 + $0x68] sm:$0xff]  ;;  %v79_v3 = vld [vmem:[#allocation5 + $0x60] sm:$0xff]  ;;  %v78_v4 = vld [vmem:[#allocation5 + $0x58] sm:$0xff]  ;;  %s173_s11 = sshll.u32 %s306_s10, 4  ;;  %s174_s11 = int_to_ptr.vmem [resolvable:$true] %s173_s11 }
  0x10   :  { %v77_v5 = vld [vmem:[#allocation5 + $0x50] sm:$0xff]  ;;  %v76_v6 = vld [vmem:[#allocation5 + $0x48] sm:$0xff]  ;;  %v75_v7 = vld [vmem:[#allocation5 + $0x40] sm:$0xff] }
  0x11   :  { %88 = vmatpush.msra.mxu0 %v81_v1  ;;  %v74_v8 = vld [vmem:[#allocation5 + $0x38] sm:$0xff]  ;;  %v73_v9 = vld [vmem:[#allocation5 + $0x30] sm:$0xff]  ;;  %v72_v10 = vld [vmem:[#allocation5 + $0x28] sm:$0xff] }
  0x12   :  { %v71_v11 = vld [vmem:[#allocation5 + $0x20] sm:$0xff]  ;;  %v70_v12 = vld [vmem:[#allocation5 + $0x18] sm:$0xff]  ;;  %v69_v13 = vld [vmem:[#allocation5 + $0x10] sm:$0xff] }
  0x13   :  { %89 = vmatpush.msra.mxu0 %v80_v2  ;;  %v68_v14 = vld [vmem:[#allocation5 + $0x8] sm:$0xff]  ;;  %v67_v15 = vld [vmem:[#allocation5] sm:$0xff]  ;;  %v66_v16 = vld [vmem:[#allocation2] sm:$0xff] }
  0x14   :  { %v142_v17 = vld [vmem:[#allocation7 + $0x78] sm:$0xff]  ;;  %v141_v18 = vld [vmem:[#allocation7 + $0x70] sm:$0xff]  ;;  %v140_v19 = vld [vmem:[#allocation7 + $0x68] sm:$0xff] }
  0x15   :  { %90 = vmatpush.msra.mxu0 %v79_v3  ;;  %147 = vmatpush.msra.mxu1 %v142_v17  ;;  %v139_v20 = vld [vmem:[#allocation7 + $0x60] sm:$0xff]  ;;  %v138_v21 = vld [vmem:[#allocation7 + $0x58] sm:$0xff]  ;;  %v137_v22 = vld [vmem:[#allocation7 + $0x50] sm:$0xff] }
  0x16   :  { %v136_v23 = vld [vmem:[#allocation7 + $0x48] sm:$0xff]  ;;  %v135_v24 = vld [vmem:[#allocation7 + $0x40] sm:$0xff]  ;;  %v134_v25 = vld [vmem:[#allocation7 + $0x38] sm:$0xff] }
  0x17   :  { %91 = vmatpush.msra.mxu0 %v78_v4  ;;  %148 = vmatpush.msra.mxu1 %v141_v18  ;;  %v133_v26 = vld [vmem:[#allocation7 + $0x30] sm:$0xff]  ;;  %v132_v27 = vld [vmem:[#allocation7 + $0x28] sm:$0xff]  ;;  %v131_v28 = vld [vmem:[#allocation7 + $0x20] sm:$0xff] }
  0x18   :  { %v130_v29 = vld [vmem:[#allocation7 + $0x18] sm:$0xff]  ;;  %v129_v30 = vld [vmem:[#allocation7 + $0x10] sm:$0xff]  ;;  %v128_v31 = vld [vmem:[#allocation7 + $0x8] sm:$0xff] }
  0x19   :  { %92 = vmatpush.msra.mxu0 %v77_v5  ;;  %149 = vmatpush.msra.mxu1 %v140_v19  ;;  %v193_v32 = vld [vmem:[%s357_s2] ss:$0 sm:$0xff]  ;;  %v127_v33 = vld [vmem:[#allocation7] sm:$0xff] }
  0x1a   :  { %v194_v50 = vld [vmem:[%s359_s4] ss:$0 sm:$0xff] }
  0x1b   :  { %93 = vmatpush.msra.mxu0 %v76_v6  ;;  %150 = vmatpush.msra.mxu1 %v139_v20 }
  0x1d   :  { %94 = vmatpush.msra.mxu0 %v75_v7  ;;  %151 = vmatpush.msra.mxu1 %v138_v21 }
  0x1f   :  { %95 = vmatpush.msra.mxu0 %v74_v8  ;;  %152 = vmatpush.msra.mxu1 %v137_v22 }
  0x21   :  { %96 = vmatpush.msra.mxu0 %v73_v9  ;;  %153 = vmatpush.msra.mxu1 %v136_v23 }
  0x23   :  { %97 = vmatpush.msra.mxu0 %v72_v10  ;;  %154 = vmatpush.msra.mxu1 %v135_v24 }
  0x25   :  { %98 = vmatpush.msra.mxu0 %v71_v11  ;;  %155 = vmatpush.msra.mxu1 %v134_v25 }
  0x27   :  { %99 = vmatpush.msra.mxu0 %v70_v12  ;;  %156 = vmatpush.msra.mxu1 %v133_v26 }
  0x29   :  { %100 = vmatpush.msra.mxu0 %v69_v13  ;;  %157 = vmatpush.msra.mxu1 %v132_v27 }
  0x2b   :  { %101 = vmatpush.msra.mxu0 %v68_v14  ;;  %158 = vmatpush.msra.mxu1 %v131_v28 }
  0x2d   :  { %102 = vmatpush.msra.mxu0 %v67_v15  ;;  %159 = vmatpush.msra.mxu1 %v130_v29 }
  0x2e   :  { %103 = vmatmul.f32.vlgmr.msra.gmra.mxu0 %v66_v16 }
  0x2f   :  { %160 = vmatpush.msra.mxu1 %v129_v30 }
  0x31   :  { %161 = vmatpush.msra.mxu1 %v128_v31 }
  0x33   :  { %162 = vmatpush.msra.mxu1 %v127_v33 }
  0xab   :  { %v104_v34 = vpop.f32.mrf.mxu0 }
  0xac   :  { %v105_v35 = vadd.f32 %v193_v32, %v104_v34 }
  0xae   :  { %v186_v36 = vmul.f32 -1.442695, %v105_v35 }
  0xb0   :  { %195 = vpow2.f32 %v186_v36 }
  0xb6   :  { %v196_v37 = vpop.eup %195 }
  0xb7   :  { %v110_v38 = vadd.f32 1.0, %v196_v37 }
  0xb9   :  { %197 = vrcp.f32 %v110_v38  ;;  %v122_v42 = vand.u32 2147483648, %v110_v38  ;;  %v120_v44 = vand.u32 2147483647, %v110_v38  ;;  %vm116_vm1 = vweird.f32 %v110_v38 }
  0xbb   :  { %v123_v46 = vor.u32 1.1754944e-38, %v122_v42  ;;  %vm121_vm3 = vcmp.eq.f32.partialorder %v120_v44, 8.507059e+37 }
  0xbf   :  { %v198_v39 = vpop.eup %197 }
  0xc0   :  { %v112_v40 = vmul.f32 %v198_v39, %v110_v38  ;;  %vm117_vm0 = vweird.f32 %v198_v39 }
  0xc1   :  { %vm118_vm2 = vmor %vm116_vm1, %vm117_vm0 }
  0xc2   :  { %v113_v41 = vsub.f32 1.0, %v112_v40 }
  0xc4   :  { %v114_v43 = vmul.f32 %v198_v39, %v113_v41 }
  0xc6   :  { %v115_v45 = vadd.f32 %v198_v39, %v114_v43 }
  0xc8   :  { %v119_v47 = vsel %vm118_vm2, %v198_v39, %v115_v45 }
  0xc9   :  { %v124_v48 = vsel %vm121_vm3, %v123_v46, %v119_v47 }
  0xca   :  { %v126_v49 = vmul.f32 %v124_v48, %v105_v35 }
  0xcc   :  { %163 = vmatmul.f32.vlgmr.msra.gmra.mxu1 %v126_v49 }
 0x149   :  { %v164_v51 = vpop.f32.mrf.mxu1 }
 0x14a   :  { %v165_v52 = vadd.f32 %v194_v50, %v164_v51 }
 0x14c   :  { %167 = vst [vmem:[#allocation8] sm:$0xff] %v165_v52 }
 0x14d   :  { %178 = dma.vmem_to_hbm [thread:$0]  %s174_s11, 128, %s176_s14, [#allocation4]  }
 0x14e   :  { %299 = dma.done.wait [#allocation4], 128  }
 0x14f   :  { %300 = vsyncadd [#allocation4], 4294967168 }
 0x150   :  { %183 = vsyncpa [#allocation3], 1 }
 0x151   :  { %184 = vsyncpa [#allocation6], 1 }
 0x152   :  { %185 = vsyncpa [#allocation4], 1 }

</bundles_post_ra>
